<compile_context>
chip_gen: v6e
topology: v6e:2x2x1
jax: 0.10.0
libtpu: 0.0.40
codegen_flags: <defaults>
</compile_context>

<pallas_src>
import jax
import jax.numpy as jnp
from jax.experimental import pallas as pl
from jax.experimental.pallas import tpu as pltpu


def _pa_kernel(x_ref, w1t_ref, b1_ref, w2_ref, b2_ref, o_ref):
    # x_ref:  (1, C, T)   block: channels on sublanes, spatial on lanes
    # w1t_ref:(Cr, C)     conv1 weight, transposed so the output is lane-dense
    # b1_ref: (Cr, 1)     conv1 bias (broadcast over lanes)
    # w2_ref: (Cr, 1)     conv2 weight (broadcast over lanes)
    # b2_ref: (1,)        conv2 bias, SMEM scalar
    # o_ref:  (1, C, T)
    x = x_ref[0]                                   # (C, T), native dtype
    w1 = w1t_ref[...].astype(x.dtype)              # cast tiny weight, not the tile
    # conv1 (1x1): (Cr, C) @ (C, T) -> (Cr, T); result already lane-dense.
    h = jnp.dot(w1, x, preferred_element_type=jnp.float32)
    h = jnp.maximum(h + b1_ref[...], 0.0)          # ReLU, (Cr, T) f32
    # conv2 (1x1) as VPU mul + sublane reduction -> (1, T)
    y = jnp.sum(h * w2_ref[...], axis=0, keepdims=True) + b2_ref[0]
    y = jax.nn.sigmoid(y)                          # (1, T) attention, f32 (EUP)
    o_ref[0] = x * y.astype(x.dtype)               # broadcast over channel sublanes


def pa_layer(x_nchw, w1, b1, w2, b2, *, target_block_bytes=2 * 1024 * 1024):
    """PALayer forward.  x_nchw: (N, C, H, W) -> (N, C, H, W)."""
    N, C, H, W = x_nchw.shape
    Cr = w1.shape[1]
    assert w1.shape == (C, Cr) and w2.shape == (Cr, 1)
    assert b1.shape == (Cr,) and b2.shape == (1,)

    HW = H * W
    x3d = x_nchw.reshape(N, C, HW)                 # free view of contiguous NCHW
    itemsize = jnp.dtype(x_nchw.dtype).itemsize

    # Lane-dense spatial tile: full H*W if it fits the byte budget, otherwise a
    # multiple of 128 (~target_block_bytes per block; double-buffered in+out
    # stays well under every chip's scoped-VMEM default).
    if HW * C * itemsize <= target_block_bytes or HW < 128:
        tile_hw = HW
    else:
        t = target_block_bytes // (C * itemsize)
        tile_hw = min(HW, max(128, (t // 128) * 128))

    grid = (N, pl.cdiv(HW, tile_hw))               # ragged last tile is OK

    w1t = jnp.asarray(w1, jnp.float32).T           # (Cr, C)
    b1c = jnp.asarray(b1, jnp.float32).reshape(Cr, 1)
    w2c = jnp.asarray(w2, jnp.float32).reshape(Cr, 1)
    b2s = jnp.asarray(b2, jnp.float32).reshape(1)  # SMEM scalar

    out3d = pl.pallas_call(
        _pa_kernel,
        out_shape=jax.ShapeDtypeStruct((N, C, HW), x_nchw.dtype),
        grid_spec=pltpu.PrefetchScalarGridSpec(
            num_scalar_prefetch=0,
            grid=grid,
            in_specs=[
                pl.BlockSpec((1, C, tile_hw), lambda n, j: (n, 0, j)),   # x tile
                pl.BlockSpec((Cr, C), lambda n, j: (0, 0)),              # w1^T
                pl.BlockSpec((Cr, 1), lambda n, j: (0, 0)),              # b1
                pl.BlockSpec((Cr, 1), lambda n, j: (0, 0)),              # w2
                pl.BlockSpec(memory_space=pltpu.MemorySpace.SMEM),       # b2
            ],
            out_specs=pl.BlockSpec((1, C, tile_hw), lambda n, j: (n, 0, j)),
        ),
        compiler_params=pltpu.CompilerParams(
            dimension_semantics=("parallel", "parallel")),
    )(x3d, w1t, b1c, w2c, b2s)

    return out3d.reshape(N, C, H, W)


def _reference(x_nchw, w1, b1, w2, b2):
    # Pure-JAX reference of the PyTorch PALayer forward (1x1 convs over NCHW).
    xf = x_nchw.astype(jnp.float32)
    h = jnp.einsum('nchw,cr->nrhw', xf, w1) + b1[None, :, None, None]
    h = jnp.maximum(h, 0.0)
    y = jnp.einsum('nrhw,ro->nohw', h, w2) + b2[None, :, None, None]
    y = jax.nn.sigmoid(y)
    return (xf * y).astype(x_nchw.dtype)


if __name__ == "__main__":
    # Small shapes consistent with the module: PALayer(64) is the smallest PA
    # in Base_Model (channel//8 = 8); spatial 16x16 so H*W is a multiple of 128.
    N, C, H, W = 2, 64, 16, 16
    Cr = C // 8

    key = jax.random.PRNGKey(0)
    kx, kw1, kb1, kw2, kb2 = jax.random.split(key, 5)

    x = jax.random.normal(kx, (N, C, H, W), dtype=jnp.float32)

    # Conv2d 1x1 kernels flattened to matmul weights: conv1 (C -> Cr), conv2 (Cr -> 1).
    w1 = jax.random.normal(kw1, (C, Cr), dtype=jnp.float32) * 0.1
    b1 = jax.random.normal(kb1, (Cr,), dtype=jnp.float32) * 0.1
    w2 = jax.random.normal(kw2, (Cr, 1), dtype=jnp.float32) * 0.1
    b2 = jax.random.normal(kb2, (1,), dtype=jnp.float32) * 0.1

    out = pa_layer(x, w1, b1, w2, b2)
    out = jax.block_until_ready(out)

    ref = _reference(x, w1, b1, w2, b2)
    assert out.shape == (N, C, H, W)
    assert jnp.allclose(out, ref, atol=1e-5, rtol=1e-5), "mismatch vs reference"

    print("KERNEL_OK")
</pallas_src>

<mosaic_0001>
module attributes {stable_mosaic.version = 11 : i64} {
  func.func @_pa_kernel(%arg0: i32, %arg1: i32, %arg2: memref<1x64x256xf32, #tpu.memory_space<vmem>>, %arg3: memref<8x64xf32, #tpu.memory_space<vmem>>, %arg4: memref<8x1xf32, #tpu.memory_space<vmem>>, %arg5: memref<8x1xf32, #tpu.memory_space<vmem>>, %arg6: memref<1xf32, #tpu.memory_space<smem>>, %arg7: memref<1x64x256xf32, #tpu.memory_space<vmem>>) attributes {dimension_semantics = [#tpu.dimension_semantics<parallel>, #tpu.dimension_semantics<parallel>], iteration_bounds = array<i64: 2, 1>, scalar_prefetch = 0 : i64, scratch_operands = 0 : i64, tpu.core_type = #tpu.core_type<tc>, window_params = [{transform_indices = @transform_0, window_bounds = array<i64: 1, 64, 256>}, {pipeline_mode = #tpu.pipeline_mode<synchronous>, transform_indices = @transform_1, window_bounds = array<i64: 8, 64>}, {pipeline_mode = #tpu.pipeline_mode<synchronous>, transform_indices = @transform_2, window_bounds = array<i64: 8, 1>}, {pipeline_mode = #tpu.pipeline_mode<synchronous>, transform_indices = @transform_3, window_bounds = array<i64: 8, 1>}, {transform_indices = @transform_4, window_bounds = array<i64: 1>}, {transform_indices = @transform_5, window_bounds = array<i64: 1, 64, 256>}]} {
    %c0 = arith.constant 0 : index
    %c0_0 = arith.constant 0 : index
    %c0_1 = arith.constant 0 : index
    %0 = vector.load %arg2[%c0, %c0_0, %c0_1] : memref<1x64x256xf32, #tpu.memory_space<vmem>>, vector<1x64x256xf32>
    %1 = vector.shape_cast %0 : vector<1x64x256xf32> to vector<64x256xf32>
    %c0_2 = arith.constant 0 : index
    %c0_3 = arith.constant 0 : index
    %2 = vector.load %arg3[%c0_2, %c0_3] : memref<8x64xf32, #tpu.memory_space<vmem>>, vector<8x64xf32>
    %cst = arith.constant dense<0.000000e+00> : vector<8x256xf32>
    %3 = tpu.matmul %2, %1, %cst {dimension_numbers = #tpu.dot_dimension_numbers<[1], [0], [0], [1], [0, 0, 1, 1], [], []>} : vector<8x64xf32>, vector<64x256xf32>, vector<8x256xf32> -> vector<8x256xf32>
    %c0_4 = arith.constant 0 : index
    %c0_5 = arith.constant 0 : index
    %4 = vector.load %arg4[%c0_4, %c0_5] : memref<8x1xf32, #tpu.memory_space<vmem>>, vector<8x1xf32>
    %5 = vector.broadcast %4 : vector<8x1xf32> to vector<8x256xf32>
    %6 = arith.addf %3, %5 : vector<8x256xf32>
    %cst_6 = arith.constant 0.000000e+00 : f32
    %7 = vector.broadcast %cst_6 : f32 to vector<8x256xf32>
    %8 = arith.maximumf %6, %7 : vector<8x256xf32>
    %c0_7 = arith.constant 0 : index
    %c0_8 = arith.constant 0 : index
    %9 = vector.load %arg5[%c0_7, %c0_8] : memref<8x1xf32, #tpu.memory_space<vmem>>, vector<8x1xf32>
    %10 = vector.broadcast %9 : vector<8x1xf32> to vector<8x256xf32>
    %11 = arith.mulf %8, %10 : vector<8x256xf32>
    %cst_9 = arith.constant dense<0.000000e+00> : vector<256xf32>
    %12 = vector.multi_reduction <add>, %11, %cst_9 [0] : vector<8x256xf32> to vector<256xf32>
    %13 = vector.shape_cast %12 : vector<256xf32> to vector<1x256xf32>
    %c0_10 = arith.constant 0 : index
    %14 = memref.load %arg6[%c0_10] : memref<1xf32, #tpu.memory_space<smem>>
    %15 = vector.broadcast %14 : f32 to vector<1x256xf32>
    %16 = arith.addf %13, %15 : vector<1x256xf32>
    %17 = arith.negf %16 : vector<1x256xf32>
    %18 = math.exp %17 : vector<1x256xf32>
    %cst_11 = arith.constant 1.000000e+00 : f32
    %19 = vector.broadcast %cst_11 : f32 to vector<1x256xf32>
    %20 = arith.addf %19, %18 : vector<1x256xf32>
    %21 = arith.divf %19, %20 : vector<1x256xf32>
    %22 = vector.broadcast %21 : vector<1x256xf32> to vector<64x256xf32>
    %23 = arith.mulf %1, %22 : vector<64x256xf32>
    %c0_12 = arith.constant 0 : index
    %c0_13 = arith.constant 0 : index
    %c0_14 = arith.constant 0 : index
    %24 = vector.load %arg7[%c0_12, %c0_13, %c0_14] : memref<1x64x256xf32, #tpu.memory_space<vmem>>, vector<1x64x256xf32>
    %25 = vector.shape_cast %24 : vector<1x64x256xf32> to vector<64x256xf32>
    %26 = vector.shape_cast %23 : vector<64x256xf32> to vector<1x64x256xf32>
    tpu.vector_store %arg7[%c0_12, %c0_13, %c0_14], %26 {strides = array<i32>} : memref<1x64x256xf32, #tpu.memory_space<vmem>>, vector<1x64x256xf32>,
    return
  }
  func.func @transform_0(%arg0: i32, %arg1: i32) -> (i32, i32, i32) {
    %c0_i32 = arith.constant 0 : i32
    %c0_i32_0 = arith.constant 0 : i32
    return %arg0, %c0_i32, %arg1 : i32, i32, i32
  }
  func.func @transform_1(%arg0: i32, %arg1: i32) -> (i32, i32) {
    %c0_i32 = arith.constant 0 : i32
    %c0_i32_0 = arith.constant 0 : i32
    %c0_i32_1 = arith.constant 0 : i32
    return %c0_i32, %c0_i32_0 : i32, i32
  }
  func.func @transform_2(%arg0: i32, %arg1: i32) -> (i32, i32) {
    %c0_i32 = arith.constant 0 : i32
    %c0_i32_0 = arith.constant 0 : i32
    %c0_i32_1 = arith.constant 0 : i32
    return %c0_i32, %c0_i32_0 : i32, i32
  }
  func.func @transform_3(%arg0: i32, %arg1: i32) -> (i32, i32) {
    %c0_i32 = arith.constant 0 : i32
    %c0_i32_0 = arith.constant 0 : i32
    %c0_i32_1 = arith.constant 0 : i32
    return %c0_i32, %c0_i32_0 : i32, i32
  }
  func.func @transform_4(%arg0: i32, %arg1: i32) -> i32 {
    %c0_i32 = arith.constant 0 : i32
    %c0_i32_0 = arith.constant 0 : i32
    return %c0_i32 : i32
  }
  func.func @transform_5(%arg0: i32, %arg1: i32) -> (i32, i32, i32) {
    %c0_i32 = arith.constant 0 : i32
    %c0_i32_0 = arith.constant 0 : i32
    return %arg0, %c0_i32, %arg1 : i32, i32, i32
  }
}

</mosaic_0001>

<bundles_post_ra>
// kernel: tpu_custom_call.1
= control target key start
LH: loop header
LB: loop body
LE: loop exit
PB: predicated region body
PF: predicated region fallthrough
CT: control target
= control target key end

     0   :  { %s1027_s0 = inlined_call_operand.hbm [shape: f32[2,64,256], index: 0, kind: input, shape index: {}]   ;;  %s1028_s1 = inlined_call_operand.vmem [shape: f32[8,64], index: 1, kind: input, shape index: {}]   ;;  %s1029_s2 = inlined_call_operand.vmem [shape: f32[8,1], index: 2, kind: input, shape index: {}]   ;;  %s1030_s3 = inlined_call_operand.vmem [shape: f32[8,1], index: 3, kind: input, shape index: {}]   ;;  %s1031_s4 = inlined_call_operand.<no memory space> [shape: f32[1], index: 4, kind: input, shape index: {}]   ;;  %s1032_s5 = inlined_call_operand.hbm [shape: f32[2,64,256], index: 5, kind: output, shape index: {}]  }
   0x1   :  { %10 = sst [smem:[#allocation2]] %s1031_s4 }
   0x2   :  { %11 = vsyncpa [#allocation4], 0 }
   0x3   :  { %13 = vsyncpa [#allocation4 + $0x1], 0 }
   0x4   :  { %14 = vsyncpa [#allocation5], 0 }
   0x5   :  { %16 = vsyncpa [#allocation5 + $0x1], 0  ;;  %s783_s20 = smov 0   ;;  %s785_s21 = smov 0  }
   0x6   :  { %s787_s22 = smov 0   ;;  %s789_s23 = smov 0  }
   0x7   :  { %s791_s24 = smov 0   ;;  %s793_s25 = smov 0  }
   0x8 LB: > { %s535_s4 = sadd.s32 4294967295, %s740_s25   ;;  %s536_s26 = sadd.s32 4294967294, %s740_s25   ;;  %s740_s25 = sphi %s793_s25, %s22_s25   ;;  %s736_s24 = sphi %s791_s24, %s1043_s24   ;;  %s732_s23 = sphi %s789_s23, %s1042_s23   ;;  %s728_s22 = sphi %s787_s22, %s1041_s22   ;;  %s724_s21 = sphi %s785_s21, %s1040_s21   ;;  %s720_s20 = sphi %s783_s20, %s1039_s20  }
   0x9   : > { %s34_s27 = sadd.s32 1, %s736_s24  ;;  %s43_s28 = sadd.s32 1, %s728_s22 }
   0xa   : > { %p36_p0 = scmp.ge.s32.totalorder %s34_s27, 2  ;;  %p50_p1 = scmp.ne.s32.totalorder %s728_s22, %s724_s21 }
   0xb   : > { %p51_p2 = scmp.eq.s32.totalorder %s740_s25, 0  ;;  %p56_p3 = scmp.ne.s32.totalorder %s724_s21, %s720_s20 }
   0xc   : > { %s1045_s27 = smov (%p36_p0, %s34_s27), 0  ;;  %p57_p5 = scmp.eq.s32.totalorder %s535_s4, 0 }
   0xd   : > { %p824_p4 = por %p51_p2, %p50_p1  ;;  %s38_s30 = ssub.s32 %s736_s24, %s1045_s27 }
   0xe   : > { %p166_p6 = scmp.eq.s32.totalorder %s535_s4, 1  ;;  %p41_p7 = scmp.eq.s32.totalorder %s38_s30, 0 }
   0xf   : > { %p830_p8 = por %p57_p5, %p56_p3  ;;  %p172_p10 = scmp.eq.s32.totalorder %s536_s26, 1 }
  0x10   : > { %p834_p9 = por %p166_p6, %p50_p1  ;;  %p567_p13 = scmp.lt.s32.totalorder %s740_s25, 2 }
  0x11   : > { %s839_s8 = scalar_select %p41_p7, %s728_s22, %s43_s28  }
  0x12   : > { %p841_p11 = por %p172_p10, %p56_p3  ;;  %s204_s10 = sand.u32 1, %s728_s22  }
  0x13   : > { %s539_s11 = sshll.u32 %s204_s10, 7  ;;  %s553_s12 = sshll.u32 %s736_s24, 11 }
  0x14   : > { %s216_s15 = scalar_lea.hbm %s1027_s0, %s553_s12  ;;  %s208_s16 = scalar_lea.vmem [#allocation3], %s539_s11 }
  0x15   : > { %s217_s17 = sshll.u32 %s208_s16, 4  ;;  %p854_p0 = pnand %p567_p13, %p824_p4  ;;  %s218_s17 = int_to_ptr.vmem [resolvable:$true] %s217_s17 }
  0x16   : > { %p542_p1 = scmp.ge.s32.totalorder %s740_s25, 1  ;;  %s205_s19 = scalar_lea.sflag [#allocation4], %s204_s10 }
  0x17   : > { %p634_p2 = pneg %p854_p0  ;;  %s645_s4 = scalar_lea.vmem %s218_s17, 2048 }
  0x18   : > { %p646_p3 = scmp.ne.s32.totalorder %s218_s17, %s645_s4  ;;  %s742_s26 = smov [#allocation3]  }
  0x19   : > { %s650_s28 = sshll.u32 %s742_s26, 4  ;;  %s651_s28 = int_to_ptr.vmem [resolvable:$false] %s650_s28 }
  0x1a   : > { %p648_p5 = pnand %p646_p3, %p634_p2  ;;  %s652_s30 = scalar_lea.vmem %s651_s28, 4096 }
  0x1b   : > { %p653_p7 = scmp.lt.s32.totalorder %s218_s17, %s651_s28  ;;  %p654_p10 = scmp.lt.s32.totalorder %s652_s30, %s645_s4 }
  0x1c   : > { %p649_p6 = pneg %p648_p5 }
  0x1d   : > { %p655_p12 = por %p654_p10, %p653_p7 }
  0x1f   : > { %p656_p4 = pnand %p655_p12, %p649_p6 }
  0x21   : > { %659 = shalt.err (!%p656_p4)
}
  0x22   : > { %s743_s29 = smov 256   ;;  %s744_s10 = smov 16  }
  0x23   : > { %562 = dma.hbm_to_vmem [thread:$0]  (!%p854_p0), %s216_s15, 2048, %s218_s17, %s205_s19, %s743_s29, %s743_s29, %s744_s10  }
  0x24   : > { %p225_p13 = scmp.lt.s32.totalorder %s740_s25, 3 }
  0x26   : > { %p226_p2 = pnand %p542_p1, %p225_p13 }
  0x27   : > { %s867_s11 = sand.u32 (!%p226_p2), 1, %s724_s21  }
  0x28   : > { %229 = sbr.rel (%p226_p2) target bundleno = 333 (0x14d), region = 40  ;;  %s543_s12 = sshll.u32 (!%p226_p2), %s867_s11, 7 }
  0x29   : > { %s232_s13 = scalar_lea.sflag (!%p226_p2), [#allocation4], %s867_s11  ;;  %s873_s14 = scalar_lea.vmem (!%p226_p2), [#allocation3], %s543_s12 }
  0x2d   : > { %711 = dma.done.wait (%p830_p8), %s232_s13, 2048  }
  0x2e   : > { %713 = vsyncadd (%p830_p8), %s232_s13, 4294965248  ;;  %v745_v0 = vmov 0.0   ;;  %v746_v1 = vmov 0   ;;  %v880_v2 = vld [vmem:[%s873_s14 + $0x78] sm:$0xff]  ;;  %v883_v3 = vld [vmem:[%s873_s14 + $0x70] sm:$0xff]  ;;  %vm287_vm0 = vcmask 523264  }
  0x2f   : > { %355 = vmatprep.mubr.f32.mxu0 %v745_v0  ;;  %623 = vset.pattern.permute.xlu0 %v746_v1  ;;  %v886_v4 = vld [vmem:[%s873_s14 + $0x68] sm:$0xff]  ;;  %v890_v5 = vld [vmem:[%s873_s14 + $0x60] sm:$0xff]  ;;  %v894_v6 = vld [vmem:[%s873_s14 + $0x58] sm:$0xff]  ;;  %s384_s4 = sld [smem:[#allocation2]]  ;;  %s554_s26 = sshll.u32 %s732_s23, 11 }
  0x30   : > { %307 = vmatprep.subr.mxu0 %v880_v2  ;;  %v898_v7 = vld [vmem:[%s873_s14 + $0x50] sm:$0xff]  ;;  %v902_v8 = vld [vmem:[%s873_s14 + $0x48] sm:$0xff]  ;;  %v906_v9 = vld [vmem:[%s873_s14 + $0x40] sm:$0xff]  ;;  %s943_s28 = scalar_lea.vmem [#allocation6], %s543_s12  ;;  %s961_s10 = scalar_lea.hbm %s1032_s5, %s554_s26 }
  0x31   : > { %308 = vmatpush1.msra.mxu0 %v883_v3  ;;  %v281_v10 = vld [vmem:[%s1029_s2] sm:$0xff]  ;;  %v913_v11 = vld [vmem:[%s873_s14 + $0x38] sm:$0xff]  ;;  %v917_v12 = vld [vmem:[%s873_s14 + $0x30] sm:$0xff]  ;;  %s448_s30 = sshll.u32 %s943_s28, 4  ;;  %s433_s12 = scalar_lea.sflag [#allocation5], %s867_s11  ;;  %s963_s30 = int_to_ptr.vmem [resolvable:$true] %s448_s30 }
  0x32   : > { %309 = vmatprep.subr.mxu0 %v886_v4  ;;  %284 = vperm.xlu0 %623, %v281_v10   ;;  %v364_v13 = vld [vmem:[%s1030_s3] sm:$0xff]  ;;  %v924_v14 = vld [vmem:[%s873_s14 + $0x28] sm:$0xff]  ;;  %v930_v16 = vld [vmem:[%s873_s14 + $0x18] sm:$0xff]  ;;  %s660_s13 = scalar_lea.vmem %s963_s30, 2048 }
  0x33   : > { %310 = vmatpush1.msra.mxu0 %v890_v5  ;;  %v268_v15 = vld [vmem:[%s873_s14 + $0x20] sm:$0xff]  ;;  %v266_v17 = vld [vmem:[%s873_s14 + $0x10] sm:$0xff]  ;;  %v265_v18 = vld [vmem:[%s873_s14 + $0x8] sm:$0xff]  ;;  %p661_p8 = scmp.ne.s32.totalorder %s963_s30, %s660_s13 }
  0x34   : > { %311 = vmatprep.subr.mxu0 %v894_v6  ;;  %v264_v19 = vld [vmem:[%s873_s14] sm:$0xff]  ;;  %s747_s14 = smov [#allocation6]  }
  0x35   : > { %312 = vmatpush1.msra.mxu0 %v898_v7  ;;  %v280_v20 = vld [vmem:[%s1028_s1] sm:$0xff]  ;;  %v385_v40 = vstv %s384_s4  ;;  %p662_p12 = pnand %p661_p8, %p834_p9  ;;  %s664_s6 = sshll.u32 %s747_s14, 4  ;;  %s665_s6 = int_to_ptr.vmem [resolvable:$false] %s664_s6 }
  0x36   : > { %313 = vmatprep.subr.mxu0 %v902_v8  ;;  %367 = vperm.xlu0 %623, %v364_v13   ;;  %s666_s15 = scalar_lea.vmem %s665_s6, 4096  ;;  %p667_p1 = scmp.lt.s32.totalorder %s963_s30, %s665_s6 }
  0x37   : > { %314 = vmatpush1.msra.mxu0 %v906_v9  ;;  %p663_p0 = pneg %p662_p12  ;;  %p668_p3 = scmp.lt.s32.totalorder %s666_s15, %s660_s13 }
  0x38   : > { %315 = vmatprep.subr.mxu0 %v913_v11 }
  0x39   : > { %316 = vmatpush1.msra.mxu0 %v917_v12  ;;  %p669_p5 = por %p668_p3, %p667_p1 }
  0x3a   : > { %317 = vmatprep.subr.mxu0 %v924_v14 }
  0x3b   : > { %318 = vmatpush1.msra.mxu0 %v268_v15  ;;  %p670_p6 = pnand %p669_p5, %p663_p0 }
  0x3c   : > { %319 = vmatprep.subr.mxu0 %v930_v16 }
  0x3d   : > { %320 = vmatpush1.msra.mxu0 %v266_v17 }
  0x3e   : > { %321 = vmatprep.subr.mxu0 %v265_v18 }
  0x3f   : > { %322 = vmatpush1.msra.mxu0 %v264_v19 }
  0x40   : > { %545 = vmatmul.mubr.msk.f32.vlgmr.msra.gmra.mxu0 %vm287_vm0, %v280_v20 }
  0xad   : > { %v285_v21 = vpop.permute.xlu0 %284 }
  0xb1   : > { %v368_v27 = vpop.permute.xlu0 %367 }
 0x100   : > { %v357_v22 = vpop.f32.mrf.mxu0 }
 0x101   : > { %v358_v23 = vadd.f32 %v357_v22, %v285_v21 }
 0x102   : > { %v359_v24 = vpop.f32.mrf.mxu0 }
 0x103   : > { %v362_v25 = vmax.f32 %v358_v23, 0.0  ;;  %v360_v26 = vadd.f32 %v359_v24, %v285_v21 }
 0x105   : > { %v370_v28 = vmul.f32 %v368_v27, %v362_v25  ;;  %v363_v29 = vmax.f32 %v360_v26, 0.0 }
 0x107   : > { %v372_v30 = vrot.slane %v370_v28, 4  ;;  %v371_v31 = vmul.f32 %v368_v27, %v363_v29 }
 0x109   : > { %v373_v32 = vadd.f32 %v372_v30, %v370_v28  ;;  %v378_v33 = vrot.slane %v371_v31, 4 }
 0x10b   : > { %v374_v34 = vrot.slane %v373_v32, 2  ;;  %v379_v35 = vadd.f32 %v378_v33, %v371_v31 }
 0x10d   : > { %v375_v36 = vadd.f32 %v374_v34, %v373_v32  ;;  %v380_v37 = vrot.slane %v379_v35, 2 }
 0x10f   : > { %v376_v38 = vrot.slane %v375_v36, 1  ;;  %v381_v39 = vadd.f32 %v380_v37, %v379_v35 }
 0x111   : > { %v377_v41 = vadd.f32 %v376_v38, %v375_v36  ;;  %v382_v42 = vrot.slane %v381_v39, 1 }
 0x113   : > { %v386_v43 = vadd.f32 %v385_v40, %v377_v41  ;;  %v383_v44 = vadd.f32 %v382_v42, %v381_v39 }
 0x115   : > { %v546_v45 = vmul.f32 -1.442695, %v386_v43  ;;  %v387_v46 = vadd.f32 %v385_v40, %v383_v44 }
 0x117   : > { %624 = vpow2.f32 %v546_v45  ;;  %v547_v47 = vmul.f32 -1.442695, %v387_v46 }
 0x119   : > { %626 = vpow2.f32 %v547_v47 }
 0x124   : > { %v625_v48 = vpop.eup %624 }
 0x125   : > { %v394_v49 = vadd.f32 1.0, %v625_v48 }
 0x126   : > { %v627_v50 = vpop.eup %626 }
 0x127   : > { %628 = vrcp.f32 %v394_v49  ;;  %v395_v51 = vadd.f32 1.0, %v627_v50 }
 0x129   : > { %630 = vrcp.f32 %v395_v51 }
 0x134   : > { %v629_v52 = vpop.eup %628 }
 0x135   : > { %v400_v53 = vmul.f32 %v629_v52, %v264_v19  ;;  %v402_v54 = vmul.f32 %v629_v52, %v266_v17  ;;  %v404_v55 = vmul.f32 %v629_v52, %v268_v15  ;;  %v406_v56 = vmul.f32 %v629_v52, %v917_v12 }
 0x136   : > { %v631_v57 = vpop.eup %630  ;;  %v408_v58 = vmul.f32 %v629_v52, %v906_v9  ;;  %v410_v59 = vmul.f32 %v629_v52, %v898_v7  ;;  %v412_v60 = vmul.f32 %v629_v52, %v890_v5  ;;  %v414_v61 = vmul.f32 %v629_v52, %v883_v3 }
 0x137   : > { %v401_v62 = vmul.f32 %v631_v57, %v265_v18  ;;  %v403_v63 = vmul.f32 %v631_v57, %v930_v16  ;;  %v405_v0 = vmul.f32 %v631_v57, %v924_v14  ;;  %v407_v1 = vmul.f32 %v631_v57, %v913_v11  ;;  %416 = vst [vmem:[%s943_s28] sm:$0xff] %v400_v53 }
 0x138   : > { %418 = vst [vmem:[%s943_s28 + $0x10] sm:$0xff] %v402_v54  ;;  %420 = vst [vmem:[%s943_s28 + $0x20] sm:$0xff] %v404_v55  ;;  %v409_v3 = vmul.f32 %v631_v57, %v902_v8  ;;  %v411_v5 = vmul.f32 %v631_v57, %v894_v6  ;;  %v413_v7 = vmul.f32 %v631_v57, %v886_v4 }
 0x139   : > { %422 = vst [vmem:[%s943_s28 + $0x30] sm:$0xff] %v406_v56  ;;  %v415_v9 = vmul.f32 %v631_v57, %v880_v2  ;;  %424 = vst [vmem:[%s943_s28 + $0x40] sm:$0xff] %v408_v58 }
 0x13a   : > { %426 = vst [vmem:[%s943_s28 + $0x50] sm:$0xff] %v410_v59  ;;  %428 = vst [vmem:[%s943_s28 + $0x60] sm:$0xff] %v412_v60 }
 0x13b   : > { %430 = vst [vmem:[%s943_s28 + $0x70] sm:$0xff] %v414_v61  ;;  %417 = vst [vmem:[%s943_s28 + $0x8] sm:$0xff] %v401_v62 }
 0x13c   : > { %419 = vst [vmem:[%s943_s28 + $0x18] sm:$0xff] %v403_v63  ;;  %421 = vst [vmem:[%s943_s28 + $0x28] sm:$0xff] %v405_v0 }
 0x13d   : > { %423 = vst [vmem:[%s943_s28 + $0x38] sm:$0xff] %v407_v1  ;;  %425 = vst [vmem:[%s943_s28 + $0x48] sm:$0xff] %v409_v3 }
 0x13e   : > { %427 = vst [vmem:[%s943_s28 + $0x58] sm:$0xff] %v411_v5  ;;  %429 = vst [vmem:[%s943_s28 + $0x68] sm:$0xff] %v413_v7 }
 0x13f   : > { %431 = vst [vmem:[%s943_s28 + $0x78] sm:$0xff] %v415_v9 }
 0x140   : > { %673 = shalt.err (!%p670_p6)
}
 0x141   : > { %s674_s16 = scalar_lea.hbm %s961_s10, 2048  ;;  %s678_s19 = scalar_lea.hbm %s1032_s5, 4096 }
 0x142   : > { %p675_p7 = scmp.ne.s32.totalorder %s961_s10, %s674_s16  ;;  %p679_p13 = scmp.lt.s32.totalorder %s961_s10, %s1032_s5 }
 0x143   : > { %p680_p2 = scmp.lt.s32.totalorder %s678_s19, %s674_s16 }
 0x144   : > { %p676_p10 = pnand %p675_p7, %p834_p9 }
 0x145   : > { %p681_p8 = por %p680_p2, %p679_p13 }
 0x146   : > { %p677_p4 = pneg %p676_p10 }
 0x148   : > { %p682_p12 = pnand %p681_p8, %p677_p4 }
 0x14a   : > { %685 = shalt.err (!%p682_p12)
}
 0x14b   : > { %s748_s28 = smov 256   ;;  %s749_s23 = smov 16  }
 0x14c   : > { %557 = dma.vmem_to_hbm [thread:$0]  (%p834_p9), %s963_s30, 2048, %s961_s10, %s433_s12, %s748_s28, %s748_s28, %s749_s23  }
 0x14d PF: > { %s463_s29 = sand.u32 1, %s720_s20   ;;  %p1038_p0 = scmp.ge.s32.totalorder %s740_s25, 2 }
 0x14e   : > { %s464_s13 = scalar_lea.sflag [#allocation5], %s463_s29 }
 0x14f   : > { %p564_p1 = pnand %p1038_p0, %p841_p11 }
 0x151   : > { %p565_p3 = pneg %p564_p1 }
 0x153   : > { %715 = dma.done.wait (%p565_p3), %s464_s13, 2048  }
 0x154   : > { %717 = vsyncadd (%p565_p3), %s464_s13, 4294965248  ;;  %s22_s25 = sadd.s32 1, %s740_s25   ;;  %s1039_s20 = smov %s724_s21 }
 0x155   : > { %p19_p5 = scmp.ge.s32.totalorder %s22_s25, 4   ;;  %s1040_s21 = smov %s728_s22 }
 0x156   : > { %s1041_s22 = smov %s839_s8  ;;  %s1042_s23 = smov %s736_s24 }
 0x157   : > { %s1043_s24 = smov %s1045_s27  ;;  %21 = sbr.rel (!%p19_p5) target bundleno = 8 (0x8), region = 85 }
 0x15c   :  { %469 = vsyncpa [#allocation4], 1 }
 0x15d   :  { %471 = vsyncpa [#allocation4 + $0x1], 1 }
 0x15e   :  { %472 = vsyncpa [#allocation5], 1 }
 0x15f   :  { %474 = vsyncpa [#allocation5 + $0x1], 1 }

</bundles_post_ra>
